<compile_context>
chip_gen: v7x
topology: tpu7x:2x2x1
jax: 0.10.0
libtpu: 0.0.40
codegen_flags: <defaults>
</compile_context>

<pallas_src>
import jax
import jax.numpy as jnp
from jax import lax
from jax.experimental import pallas as pl
from jax.experimental.pallas import tpu as pltpu

_LANE = 128


def _round_up(x, m):
    return ((x + m - 1) // m) * m


def _sublane_multiple(itemsize):
    # Packed sublane tiles: f32 -> 8, bf16/f16 -> 16, int8/fp8 -> 32.
    return {4: 8, 2: 16, 1: 32}.get(itemsize, 8)


def _pick_tile(padded_dim, cap):
    """Largest multiple of 128 that divides `padded_dim` and is <= cap."""
    q = padded_dim // _LANE
    best = _LANE
    for d in range(1, q + 1):
        t = d * _LANE
        if q % d == 0 and t <= cap:
            best = t
    return best


def _linear_kernel_out_acc(x_ref, w_ref, o_ref):
    """f32-output path: accumulate directly into the VMEM-resident output block."""
    a = x_ref[...]
    b = w_ref[...]
    if a.dtype != b.dtype:                       # trace-time branch (in-kernel cast)
        cdt = jnp.promote_types(a.dtype, b.dtype)
        a = a.astype(cdt)
        b = b.astype(cdt)
    partial = lax.dot_general(
        a, b,
        dimension_numbers=(((1,), (1,)), ((), ())),   # contract last dims (W is (N, K))
        preferred_element_type=jnp.float32,
    )

    @pl.when(pl.program_id(2) == 0)
    def _():
        o_ref[...] = partial

    @pl.when(pl.program_id(2) != 0)
    def _():
        o_ref[...] += partial


def _linear_kernel_scratch(x_ref, w_ref, o_ref, acc_ref):
    """Narrow-output (bf16/f16) path: f32 scratch accumulator + final cast."""
    @pl.when(pl.program_id(2) == 0)
    def _():
        acc_ref[...] = jnp.zeros_like(acc_ref)

    a = x_ref[...]
    b = w_ref[...]
    if a.dtype != b.dtype:
        cdt = jnp.promote_types(a.dtype, b.dtype)
        a = a.astype(cdt)
        b = b.astype(cdt)
    acc_ref[...] += lax.dot_general(
        a, b,
        dimension_numbers=(((1,), (1,)), ((), ())),
        preferred_element_type=jnp.float32,
    )

    @pl.when(pl.program_id(2) == pl.num_programs(2) - 1)
    def _():
        o_ref[...] = acc_ref[...].astype(o_ref.dtype)


def prepare_weight(weight, *, dtype=None):
    """One-time (model-load) weight preparation.

    Optionally casts W (e.g. to bf16 for the practical inference path — halves the
    dominant HBM stream, native MXU rate, f32 accumulation is kept in-kernel) and
    zero-pads both dims up to multiples of 128 so my_linear never has to re-pad W
    per call.  Layout stays PyTorch (out_features, in_features); pass the logical
    out_features to my_linear(..., out_features=...) when using the padded weight.
    """
    if dtype is not None:
        weight = weight.astype(dtype)
    n, k = weight.shape
    np_, kp_ = _round_up(n, _LANE), _round_up(k, _LANE)
    if (np_, kp_) != (n, k):
        weight = jnp.pad(weight, ((0, np_ - n), (0, kp_ - k)))
    return weight


def my_linear(x, weight, *, out_features=None, tm=None, tn=None, tk=None,
              force_pallas=False):
    """y = x @ weight.T  (myLinear forward, no bias).

    x:      (M, K)
    weight: (N, K) PyTorch layout; optionally pre-padded / pre-cast via prepare_weight
            (then pass out_features=logical N).
    """
    M, K = x.shape
    Nw, Kw = weight.shape
    N = Nw if out_features is None else out_features
    assert Kw >= K, "in_features mismatch"

    out_dtype = jnp.promote_types(x.dtype, weight.dtype)

    # Small problems: pallas_call fixed overhead + 128-wide padding dwarf the math.
    if not force_pallas and 2 * M * N * K < (1 << 22):
        return jnp.dot(x, weight[:N, :K].T).astype(out_dtype)

    x_isz = jnp.dtype(x.dtype).itemsize
    w_isz = jnp.dtype(weight.dtype).itemsize
    o_isz = jnp.dtype(out_dtype).itemsize

    # ---- tile selection ---------------------------------------------------
    Np0 = _round_up(Nw, _LANE)           # 128-aligned weight dims (prepared W is already here)
    Kp0 = _round_up(Kw, _LANE)

    sub = _sublane_multiple(min(x_isz, w_isz))
    if tm is None:
        tm = min(512, _round_up(M, sub))
    small_m = tm <= 64                   # weight-streaming regime: grow N/K tiles
    tn_auto = tn is None
    if tn is None:
        tn = _pick_tile(Np0, 1024 if small_m else 512)
    if tk is None:
        tk = _pick_tile(Kp0, 2048 if small_m else 1024)

    # v7x has 2 TensorCores sharded over "parallel" grid axes: give them >= 2
    # parallel iterations when N allows it (harmless on single-TC v5e/v6e).
    if tn_auto and (_round_up(M, tm) // tm) * (Np0 // tn) == 1 and Np0 >= 2 * _LANE:
        tn = _pick_tile(Np0, max(_LANE, Np0 // 2))

    Mp = _round_up(M, tm)
    Np = _round_up(Np0, tn)
    Kp = _round_up(Kp0, tk)

    # ---- pad inputs to tile multiples --------------------------------------
    if (Mp, Kp) != (M, K):
        x = jnp.pad(x, ((0, Mp - M), (0, Kp - K)))    # zero K-padding: no-op for the dot
    if (Np, Kp) != (Nw, Kw):
        # Only hit for raw, unprepared weights; prefer prepare_weight() at model load.
        weight = jnp.pad(weight, ((0, Np - Nw), (0, Kp - Kw)))

    grid = (Mp // tm, Np // tn, Kp // tk)

    use_scratch = out_dtype != jnp.float32
    kernel = _linear_kernel_scratch if use_scratch else _linear_kernel_out_acc
    scratch_shapes = [pltpu.VMEM((tm, tn), jnp.float32)] if use_scratch else []

    # Double-buffered working set -> scoped VMEM limit (v5e default is only 16 MiB);
    # capped at 48 MiB to keep headroom on v7x's 64 MiB physical VMEM.
    ws = 2 * tm * tk * x_isz + 2 * tn * tk * w_isz + 2 * tm * tn * o_isz
    if use_scratch:
        ws += tm * tn * 4
    vmem_limit = min(48 << 20, max(32 << 20, int(1.5 * ws)))

    # HBM bytes with reuse accounted for: x streamed once per N-tile, W once per M-tile.
    bytes_accessed = (Mp * Kp * x_isz * (Np // tn)
                      + Np * Kp * w_isz * (Mp // tm)
                      + Mp * Np * o_isz)

    y = pl.pallas_call(
        kernel,
        out_shape=jax.ShapeDtypeStruct((Mp, Np), out_dtype),
        grid_spec=pltpu.PrefetchScalarGridSpec(
            num_scalar_prefetch=0,
            grid=grid,
            in_specs=[
                pl.BlockSpec((tm, tk), lambda i, j, k: (i, k)),   # x  (M, K)
                pl.BlockSpec((tn, tk), lambda i, j, k: (j, k)),   # W  (N, K), native layout
            ],
            out_specs=pl.BlockSpec((tm, tn), lambda i, j, k: (i, j)),
            scratch_shapes=scratch_shapes,
        ),
        compiler_params=pltpu.CompilerParams(
            dimension_semantics=("parallel", "parallel", "arbitrary"),
            vmem_limit_bytes=vmem_limit,
        ),
        cost_estimate=pl.CostEstimate(
            flops=2 * Mp * Np * Kp,
            transcendentals=0,
            bytes_accessed=bytes_accessed,
        ),
    )(x, weight)

    if (Mp, Np) != (M, N):
        y = y[:M, :N]
    return y


if __name__ == "__main__":
    # Small shapes consistent with the module: batch=8, in_features=32, out_features=16.
    batch, in_features, out_features = 8, 32, 16

    key = jax.random.PRNGKey(0)
    kx, kw = jax.random.split(key)
    x = jax.random.normal(kx, (batch, in_features), dtype=jnp.float32)
    # Deterministic init matching nn.Parameter(...).uniform_(-0.1, 0.1)
    weight = jax.random.uniform(
        kw, (out_features, in_features), dtype=jnp.float32, minval=-0.1, maxval=0.1
    )

    # High-precision reference y = x @ W^T.
    y_ref = jnp.dot(x, weight.T, precision=lax.Precision.HIGHEST)

    # 1) Pallas kernel path (forced; the small-problem fallback would kick in otherwise).
    y = my_linear(x, weight, force_pallas=True)
    jax.block_until_ready(y)
    assert y.shape == (batch, out_features)
    assert jnp.allclose(y, y_ref, atol=5e-3, rtol=5e-3)

    # 2) Small-problem fallback path (plain jnp.dot).
    y_fb = my_linear(x, weight)
    assert jnp.allclose(y_fb, y_ref, atol=5e-3, rtol=5e-3)

    # 3) Practical inference path: weight prepared once (bf16 cast + 128-aligned pad),
    #    bf16 activations, f32 accumulation inside the kernel.
    w_bf16 = prepare_weight(weight, dtype=jnp.bfloat16)
    y_bf16 = my_linear(x.astype(jnp.bfloat16), w_bf16,
                       out_features=out_features, force_pallas=True)
    jax.block_until_ready(y_bf16)
    assert y_bf16.shape == (batch, out_features)
    assert jnp.allclose(y_bf16.astype(jnp.float32), y_ref, atol=5e-2, rtol=5e-2)

    # TODO(synk): backward (grad_input, grad_weight) from myLinearFunction is not
    # implemented; only the forward pass is required here.

    print("KERNEL_OK")
</pallas_src>

<mosaic_0001>
module attributes {stable_mosaic.version = 11 : i64} {
  func.func @_linear_kernel_out_acc(%arg0: i32, %arg1: i32, %arg2: i32, %arg3: memref<8x128xf32, #tpu.memory_space<vmem>>, %arg4: memref<128x128xf32, #tpu.memory_space<vmem>>, %arg5: memref<8x128xf32, #tpu.memory_space<vmem>>) attributes {dimension_semantics = [#tpu.dimension_semantics<parallel>, #tpu.dimension_semantics<parallel>, #tpu.dimension_semantics<arbitrary>], iteration_bounds = array<i64: 1, 1, 1>, scalar_prefetch = 0 : i64, scratch_operands = 0 : i64, tpu.core_type = #tpu.core_type<tc>, window_params = [{transform_indices = @transform_0, window_bounds = array<i64: 8, 128>}, {transform_indices = @transform_1, window_bounds = array<i64: 128, 128>}, {transform_indices = @transform_2, window_bounds = array<i64: 8, 128>}]} {
    %c0 = arith.constant 0 : index
    %c0_0 = arith.constant 0 : index
    %0 = vector.load %arg3[%c0, %c0_0] : memref<8x128xf32, #tpu.memory_space<vmem>>, vector<8x128xf32>
    %c0_1 = arith.constant 0 : index
    %c0_2 = arith.constant 0 : index
    %1 = vector.load %arg4[%c0_1, %c0_2] : memref<128x128xf32, #tpu.memory_space<vmem>>, vector<128x128xf32>
    %cst = arith.constant dense<0.000000e+00> : vector<8x128xf32>
    %2 = tpu.matmul %0, %1, %cst {dimension_numbers = #tpu.dot_dimension_numbers<[1], [1], [0], [0], [0, 0, 1, 0], [], []>} : vector<8x128xf32>, vector<128x128xf32>, vector<8x128xf32> -> vector<8x128xf32>
    %c0_i32 = arith.constant 0 : i32
    %3 = arith.cmpi eq, %arg2, %c0_i32 : i32
    %4 = arith.extui %3 : i1 to i32
    %c0_i32_3 = arith.constant 0 : i32
    %5 = arith.cmpi ne, %4, %c0_i32_3 : i32
    scf.if %5 {
      %c0_6 = arith.constant 0 : index
      %c0_7 = arith.constant 0 : index
      %9 = vector.load %arg5[%c0_6, %c0_7] : memref<8x128xf32, #tpu.memory_space<vmem>>, vector<8x128xf32>
      tpu.vector_store %arg5[%c0_6, %c0_7], %2 {strides = array<i32>} : memref<8x128xf32, #tpu.memory_space<vmem>>, vector<8x128xf32>,
    } else {
    }
    %c0_i32_4 = arith.constant 0 : i32
    %6 = arith.cmpi ne, %arg2, %c0_i32_4 : i32
    %7 = arith.extui %6 : i1 to i32
    %c0_i32_5 = arith.constant 0 : i32
    %8 = arith.cmpi ne, %7, %c0_i32_5 : i32
    scf.if %8 {
      %c0_6 = arith.constant 0 : index
      %c0_7 = arith.constant 0 : index
      %9 = vector.load %arg5[%c0_6, %c0_7] : memref<8x128xf32, #tpu.memory_space<vmem>>, vector<8x128xf32>
      %10 = arith.addf %9, %2 : vector<8x128xf32>
      %c0_8 = arith.constant 0 : index
      %c0_9 = arith.constant 0 : index
      %11 = vector.load %arg5[%c0_8, %c0_9] : memref<8x128xf32, #tpu.memory_space<vmem>>, vector<8x128xf32>
      tpu.vector_store %arg5[%c0_8, %c0_9], %10 {strides = array<i32>} : memref<8x128xf32, #tpu.memory_space<vmem>>, vector<8x128xf32>,
    } else {
    }
    return
  }
  func.func @transform_0(%arg0: i32, %arg1: i32, %arg2: i32) -> (i32, i32) {
    %c0_i32 = arith.constant 0 : i32
    return %arg0, %arg2 : i32, i32
  }
  func.func @transform_1(%arg0: i32, %arg1: i32, %arg2: i32) -> (i32, i32) {
    %c0_i32 = arith.constant 0 : i32
    return %arg1, %arg2 : i32, i32
  }
  func.func @transform_2(%arg0: i32, %arg1: i32, %arg2: i32) -> (i32, i32) {
    %c0_i32 = arith.constant 0 : i32
    return %arg0, %arg1 : i32, i32
  }
}

</mosaic_0001>

<bundles_post_ra>
// kernel: tpu_custom_call.1
= control target key start
LH: loop header
LB: loop body
LE: loop exit
PB: predicated region body
PF: predicated region fallthrough
CT: control target
= control target key end

     0   :  { %7 = vsyncpa [#allocation3], 0  ;;  %s375_s0 = inlined_call_operand.hbm [shape: f32[8,128], index: 0, kind: input, shape index: {}]   ;;  %s376_s1 = inlined_call_operand.hbm [shape: f32[128,128], index: 1, kind: input, shape index: {}]   ;;  %s377_s2 = inlined_call_operand.hbm [shape: f32[8,128], index: 2, kind: output, shape index: {}]  }
   0x1   :  { %8 = vsyncpa [#allocation6], 0 }
   0x2   :  { %9 = vsyncpa [#allocation4], 0  ;;  %s309_s9 = smov [#allocation2]   ;;  %s310_s11 = smov [#allocation5]  }
   0x3   :  { %s16_s10 = sshll.u32 %s309_s9, 4  ;;  %s25_s12 = sshll.u32 %s310_s11, 4  ;;  %s17_s10 = int_to_ptr.vmem [resolvable:$true] %s16_s10  ;;  %s332_s12 = int_to_ptr.vmem [resolvable:$true] %s25_s12 }
   0x4   :  { %s237_s15 = scalar_lea.hbm %s375_s0, 128 }
   0x5   :  { %p238_p0 = scmp.ne.s32.totalorder %s375_s0, %s237_s15  ;;  %p241_p1 = scmp.lt.u32.totalorder %s237_s15, %s375_s0 }
   0x7   :  { %p243_p2 = pnand %p241_p1, %p238_p0 }
   0x9   :  { %246 = shalt.err (!%p243_p2)
}
   0xa   :  { %s247_s20 = scalar_lea.vmem %s17_s10, 128  ;;  %p252_p4 = scmp.lt.s32.totalorder %s17_s10, %s17_s10 }
   0xb   :  { %p248_p3 = scmp.ne.s32.totalorder %s17_s10, %s247_s20  ;;  %p253_p5 = scmp.lt.s32.totalorder %s247_s20, %s247_s20 }
   0xd   :  { %p254_p6 = por %p253_p5, %p252_p4 }
   0xf   :  { %p255_p7 = pnand %p254_p6, %p248_p3 }
  0x11   :  { %258 = shalt.err (!%p255_p7)
}
  0x12   :  { %19 = dma.hbm_to_vmem [thread:$0]  %s375_s0, 128, %s17_s10, [#allocation3]  }
  0x13   :  { %s259_s25 = scalar_lea.hbm %s376_s1, 2048 }
  0x14   :  { %p260_p8 = scmp.ne.s32.totalorder %s376_s1, %s259_s25  ;;  %p263_p9 = scmp.lt.u32.totalorder %s259_s25, %s376_s1 }
  0x16   :  { %p265_p10 = pnand %p263_p9, %p260_p8 }
  0x18   :  { %268 = shalt.err (!%p265_p10)
}
  0x19   :  { %s269_s30 = scalar_lea.vmem %s332_s12, 2048  ;;  %p274_p12 = scmp.lt.s32.totalorder %s332_s12, %s332_s12 }
  0x1a   :  { %p270_p11 = scmp.ne.s32.totalorder %s332_s12, %s269_s30  ;;  %p275_p13 = scmp.lt.s32.totalorder %s269_s30, %s269_s30 }
  0x1c   :  { %p276_p0 = por %p275_p13, %p274_p12 }
  0x1e   :  { %p277_p1 = pnand %p276_p0, %p270_p11 }
  0x20   :  { %280 = shalt.err (!%p277_p1)
}
  0x21   :  { %s311_s0 = smov 128   ;;  %s312_s3 = smov 8  }
  0x22   :  { %31 = dma.hbm_to_vmem [thread:$0]  %s376_s1, 2048, %s332_s12, [#allocation6], %s311_s0, %s311_s0, %s312_s3  }
  0x23   :  { %303 = dma.done.wait [#allocation3], 128  }
  0x24   :  { %304 = vsyncadd [#allocation3], 4294967168 }
  0x25   :  { %305 = dma.done.wait [#allocation6], 2048  }
  0x26   :  { %306 = vsyncadd [#allocation6], 4294965248  ;;  %v313_v0 = vmov 0.0|0.0   ;;  %vm314_vm0 = vmmov 0   ;;  %v315_v1 = vmov 0.0   ;;  %v39_v2 = vld [vmem:[#allocation5] sm:$0xff] }
  0x27   :  { %205 = vmatprep.subr.bf16.mxu0 %v313_v0  ;;  %202 = vmatprep.mubr.msk.f32.mxu0 %vm314_vm0, %v315_v1  ;;  %v40_v3 = vld [vmem:[#allocation5 + $0x8] sm:$0xff]  ;;  %v41_v5 = vld [vmem:[#allocation5 + $0x10] sm:$0xff]  ;;  %v42_v6 = vld [vmem:[#allocation5 + $0x18] sm:$0xff]  ;;  %s316_s1 = smov [#allocation7]  }
  0x28   :  { %v206_v4 = vpack.c.bf16 %v40_v3, %v39_v2  ;;  %v209_v7 = vpack.c.bf16 %v42_v6, %v41_v5  ;;  %v43_v8 = vld [vmem:[#allocation5 + $0x20] sm:$0xff]  ;;  %v44_v9 = vld [vmem:[#allocation5 + $0x28] sm:$0xff]  ;;  %v45_v11 = vld [vmem:[#allocation5 + $0x30] sm:$0xff]  ;;  %s143_s6 = sshll.u32 %s316_s1, 4  ;;  %s144_s6 = int_to_ptr.vmem [resolvable:$true] %s143_s6 }
  0x29   :  { %v212_v10 = vpack.c.bf16 %v44_v9, %v43_v8  ;;  %v46_v12 = vld [vmem:[#allocation5 + $0x38] sm:$0xff]  ;;  %v47_v14 = vld [vmem:[#allocation5 + $0x40] sm:$0xff]  ;;  %v48_v15 = vld [vmem:[#allocation5 + $0x48] sm:$0xff]  ;;  %s281_s7 = scalar_lea.vmem %s144_s6, 128  ;;  %p286_p3 = scmp.lt.s32.totalorder %s144_s6, %s144_s6 }
  0x2a   :  { %207 = vmatpush3.bf16.xpose.msra.mxu0 %v206_v4  ;;  %v215_v13 = vpack.c.bf16 %v46_v12, %v45_v11  ;;  %v218_v16 = vpack.c.bf16 %v48_v15, %v47_v14  ;;  %v49_v17 = vld [vmem:[#allocation5 + $0x50] sm:$0xff]  ;;  %v50_v18 = vld [vmem:[#allocation5 + $0x58] sm:$0xff]  ;;  %v51_v20 = vld [vmem:[#allocation5 + $0x60] sm:$0xff]  ;;  %p282_p2 = scmp.ne.s32.totalorder %s144_s6, %s281_s7  ;;  %p287_p4 = scmp.lt.s32.totalorder %s281_s7, %s281_s7 }
  0x2b   :  { %208 = vmatprep.subr.bf16.mxu0 %v313_v0  ;;  %v221_v19 = vpack.c.bf16 %v50_v18, %v49_v17  ;;  %v52_v21 = vld [vmem:[#allocation5 + $0x68] sm:$0xff]  ;;  %v53_v23 = vld [vmem:[#allocation5 + $0x70] sm:$0xff]  ;;  %v54_v24 = vld [vmem:[#allocation5 + $0x78] sm:$0xff] }
  0x2c   :  { %v224_v22 = vpack.c.bf16 %v52_v21, %v51_v20  ;;  %v227_v25 = vpack.c.bf16 %v54_v24, %v53_v23  ;;  %v38_v26 = vld [vmem:[#allocation2] sm:$0xff]  ;;  %p288_p5 = por %p287_p4, %p286_p3 }
  0x2e   :  { %p289_p6 = pnand %p288_p5, %p282_p2 }
  0x32   :  { %210 = vmatpush3.bf16.xpose.msra.mxu0 %v209_v7 }
  0x33   :  { %211 = vmatprep.subr.bf16.mxu0 %v313_v0 }
  0x3a   :  { %213 = vmatpush3.bf16.xpose.msra.mxu0 %v212_v10 }
  0x3b   :  { %214 = vmatprep.subr.bf16.mxu0 %v313_v0 }
  0x42   :  { %216 = vmatpush3.bf16.xpose.msra.mxu0 %v215_v13 }
  0x43   :  { %217 = vmatprep.subr.bf16.mxu0 %v313_v0 }
  0x4a   :  { %219 = vmatpush3.bf16.xpose.msra.mxu0 %v218_v16 }
  0x4b   :  { %220 = vmatprep.subr.bf16.mxu0 %v313_v0 }
  0x52   :  { %222 = vmatpush3.bf16.xpose.msra.mxu0 %v221_v19 }
  0x53   :  { %223 = vmatprep.subr.bf16.mxu0 %v313_v0 }
  0x5a   :  { %225 = vmatpush3.bf16.xpose.msra.mxu0 %v224_v22 }
  0x5b   :  { %226 = vmatprep.subr.bf16.mxu0 %v313_v0 }
  0x62   :  { %228 = vmatpush3.bf16.xpose.msra.mxu0 %v227_v25 }
  0x69   :  { %203 = vmatmul.mubr.f32.vlgmr.msra.gmra.mrb[0].mxu0 %v38_v26 }
 0x13c   :  { %v121_v27 = vpop.f32.mrb[0].mxu0 }
 0x13d   :  { %129 = vst [vmem:[#allocation7] sm:$0xff] %v121_v27  ;;  %v204_v28 = vpop.f32.mrb[1].mxu0 }
 0x13e   :  { %292 = shalt.err (!%p289_p6)
}
 0x13f   :  { %s293_s10 = scalar_lea.hbm %s377_s2, 128 }
 0x140   :  { %p294_p7 = scmp.ne.s32.totalorder %s377_s2, %s293_s10  ;;  %p297_p8 = scmp.lt.u32.totalorder %s293_s10, %s377_s2 }
 0x142   :  { %p299_p9 = pnand %p297_p8, %p294_p7 }
 0x144   :  { %302 = shalt.err (!%p299_p9)
}
 0x145   :  { %146 = dma.vmem_to_hbm [thread:$0]  %s144_s6, 128, %s377_s2, [#allocation4]  }
 0x146   :  { %307 = dma.done.wait [#allocation4], 128  }
 0x147   :  { %308 = vsyncadd [#allocation4], 4294967168 }
 0x148   :  { %150 = vsyncpa [#allocation3], 1 }
 0x149   :  { %151 = vsyncpa [#allocation6], 1 }
 0x14a   :  { %152 = vsyncpa [#allocation4], 1 }

</bundles_post_ra>
